<compile_context>
chip_gen: v6e
topology: v6e:2x2x1
jax: 0.10.0
libtpu: 0.0.40
codegen_flags: <defaults>
</compile_context>

<pallas_src>
import math

import jax
import jax.numpy as jnp
import numpy as np
from jax import lax
from jax.experimental import pallas as pl
from jax.experimental.pallas import tpu as pltpu


def _round_up(v, m):
    return ((v + m - 1) // m) * m


_MAX_TILE_PIX = 1024   # output pixels per step on the lane axis (review: 512-1024)
_MAX_TILE_K = 2048     # contraction tile; the K grid axis kicks in beyond this


# ---------------------------------------------------------------------------
# Pallas kernel: tiled matmul with a K reduction axis (patterns P1 + P3).
#   wt_ref  : (Cout, TK)    bf16  weight^T tile (contraction on lanes)
#   col_ref : (1, TK, TP)   bf16  im2col tile  (output pixels on lanes)
#   o_ref   : (1, Cout, TP) x-dtype output tile (natively NCHW, lane dense)
#   acc_ref : (Cout, TP)    f32   VMEM accumulator, resident across the K axis
# ---------------------------------------------------------------------------
def _qconv_matmul_kernel(wt_ref, col_ref, o_ref, acc_ref):
    @pl.when(pl.program_id(2) == 0)
    def _():
        acc_ref[...] = jnp.zeros_like(acc_ref)

    # bf16 operands, f32 accumulation on the MXU; K is padded to 128 so the
    # contraction is never lane-masked.  Bias is already folded into K.
    acc_ref[...] += jnp.dot(wt_ref[...], col_ref[0],
                            preferred_element_type=jnp.float32)

    @pl.when(pl.program_id(2) == pl.num_programs(2) - 1)
    def _():
        # Full-lane, unpadded store in the caller's dtype.
        o_ref[0] = acc_ref[...].astype(o_ref.dtype)


# ---------------------------------------------------------------------------
# Glue: Hamilton-product weight assembly + im2col / layout plumbing (JAX).
# ---------------------------------------------------------------------------
def make_quaternion_weight(r, i, j, k):
    """r,i,j,k: (O/4, I/4, kh, kw) -> full (O, I, kh, kw) quaternion weight."""
    row_r = jnp.concatenate([r, -i, -j, -k], axis=1)
    row_i = jnp.concatenate([i, r, -k, j], axis=1)
    row_j = jnp.concatenate([j, k, r, -i], axis=1)
    row_k = jnp.concatenate([k, -j, i, r], axis=1)
    return jnp.concatenate([row_r, row_i, row_j, row_k], axis=0)


def _vmem_limit_bytes():
    """Per-generation VMEM budget (review: size v7x 64 MiB vs 128 MiB parts)."""
    cap = None
    try:
        cap = getattr(pltpu.get_tpu_info(), "vmem_capacity_bytes", None)
    except Exception:
        cap = None
    if not cap:
        cap = 64 * 1024 * 1024          # conservative fallback, safe on all gens
    return min(int(cap * 7 // 8), 112 * 1024 * 1024)


def quaternion_conv2d(x_nchw, r_w, i_w, j_w, k_w, bias, *, stride=1, padding=0,
                      dilation=1):
    """Forward pass of QuaternionConv (2-D conv path, rotation=False, groups=1)."""
    w_oihw = make_quaternion_weight(r_w, i_w, j_w, k_w)          # (O, I, KH, KW)
    c_out, c_in, KH, KW = w_oihw.shape
    n, c, h, w = x_nchw.shape
    assert c == c_in, "input channels must match 4 * (in_channels // 4)"
    out_dtype = x_nchw.dtype

    # Stay in NCHW end-to-end (no input/output layout transposes).  Spatial
    # zero-pad + bf16 cast is one fused XLA pass.
    xp = jnp.pad(x_nchw.astype(jnp.bfloat16),
                 ((0, 0), (0, 0), (padding, padding), (padding, padding)))
    hp, wp = h + 2 * padding, w + 2 * padding
    oh = (hp - dilation * (KH - 1) - 1) // stride + 1
    ow = (wp - dilation * (KW - 1) - 1) // stride + 1
    P = oh * ow

    # ---- wrapper-side im2col: col[b, (kh*KW+kw)*Cin + cin, oh*OW + ow]
    #                              = x_pad[b, cin, oh*s + kh*d, ow*s + kw*d]
    taps = []
    for kh in range(KH):
        h0 = kh * dilation
        for kw in range(KW):
            w0 = kw * dilation
            taps.append(xp[:, :, h0:h0 + (oh - 1) * stride + 1:stride,
                           w0:w0 + (ow - 1) * stride + 1:stride])
    col = jnp.concatenate(taps, axis=1).reshape(n, KH * KW * c_in, P)
    # Fold the bias in as one extra contraction row (ones in col, bias in W^T).
    col = jnp.concatenate([col, jnp.ones((n, 1, P), jnp.bfloat16)], axis=1)
    K_eff = KH * KW * c_in + 1

    # ---- tiling: lane-dense pixel tiles, K padded to a multiple of 128.
    TP = min(_MAX_TILE_PIX, _round_up(P, 128))
    P_pad = _round_up(P, TP)
    TK = min(_MAX_TILE_K, _round_up(K_eff, 128))
    K_pad = _round_up(K_eff, TK)
    col = jnp.pad(col, ((0, 0), (0, K_pad - K_eff), (0, P_pad - P)))

    # weight^T: (Cout, K_pad) bf16, K ordered (kh, kw, cin) to match col.
    wt = jnp.transpose(w_oihw, (0, 2, 3, 1)).reshape(c_out, KH * KW * c_in)
    wt = jnp.concatenate([wt, bias.reshape(c_out, 1).astype(wt.dtype)], axis=1)
    wt = jnp.pad(wt, ((0, 0), (0, K_pad - K_eff))).astype(jnp.bfloat16)

    # TODO(synk): for tiny OH*OW with large batch, flatten the batch into the
    # pixel axis so one tile spans multiple images (review note); kept per-image
    # here to keep the output natively NCHW with zero post-kernel transposes.
    grid = (n, P_pad // TP, K_pad // TK)

    out = pl.pallas_call(
        _qconv_matmul_kernel,
        out_shape=jax.ShapeDtypeStruct((n, c_out, P_pad), out_dtype),
        grid_spec=pltpu.PrefetchScalarGridSpec(
            num_scalar_prefetch=0,
            grid=grid,
            in_specs=[
                pl.BlockSpec((c_out, TK), lambda b, t, k: (0, k)),
                pl.BlockSpec((1, TK, TP), lambda b, t, k: (b, k, t)),
            ],
            out_specs=pl.BlockSpec((1, c_out, TP), lambda b, t, k: (b, 0, t)),
            scratch_shapes=[pltpu.VMEM((c_out, TP), jnp.float32)],
        ),
        compiler_params=pltpu.CompilerParams(
            # batch and pixel-tile axes both parallel -> megacore stays busy
            # even for batch=1; K is the in-order reduction axis.
            dimension_semantics=("parallel", "parallel", "arbitrary"),
            vmem_limit_bytes=_vmem_limit_bytes(),
        ),
    )(wt, col)

    # Output is already NCHW: drop the pixel padding (no-op when P_pad == P)
    # and reshape.  No transpose, no cast, no Cout padding.
    return out[:, :, :P].reshape(n, c_out, oh, ow)


# ---------------------------------------------------------------------------
# Deterministic parameter construction (synthetic; matches module shapes).
# ---------------------------------------------------------------------------
def init_quaternion_conv_params(key, in_channels, out_channels, kernel_size):
    iq, oq = in_channels // 4, out_channels // 4
    w_shape = (oq, iq, kernel_size, kernel_size)
    fan_in = iq * kernel_size * kernel_size
    fan_out = oq * kernel_size * kernel_size
    s = 1.0 / math.sqrt(2.0 * (fan_in + fan_out))                 # glorot criterion
    kr, ki, kj, kk = jax.random.split(key, 4)
    # TODO(synk): exact chi(4)-modulus quaternion_init RNG stream not replicated;
    # deterministic glorot-scaled normal init of identical shapes instead.
    r_w = s * jax.random.normal(kr, w_shape, jnp.float32)
    i_w = s * jax.random.normal(ki, w_shape, jnp.float32)
    j_w = s * jax.random.normal(kj, w_shape, jnp.float32)
    k_w = s * jax.random.normal(kk, w_shape, jnp.float32)
    bias = jnp.zeros((out_channels,), jnp.float32)                # reset_parameters zeros bias
    return r_w, i_w, j_w, k_w, bias


if __name__ == "__main__":
    key = jax.random.PRNGKey(0)
    key_x, key_p = jax.random.split(key)

    # Small shapes consistent with the module: channels divisible by 4, NCHW.
    batch, in_channels, out_channels = 2, 8, 8
    H = W = 16
    kernel_size = 3

    x = jax.random.normal(key_x, (batch, in_channels, H, W), jnp.float32)
    r_w, i_w, j_w, k_w, bias = init_quaternion_conv_params(
        key_p, in_channels, out_channels, kernel_size)

    # Check both the unit-stride and a strided config (review correctness item).
    for (stride, padding, dilation) in [(1, 1, 1), (2, 1, 1)]:
        out = quaternion_conv2d(
            x, r_w, i_w, j_w, k_w, bias,
            stride=stride, padding=padding, dilation=dilation)
        out = jax.block_until_ready(out)

        # Reference: plain f32 conv2d with the assembled quaternion weight (XLA).
        w_full = make_quaternion_weight(r_w, i_w, j_w, k_w)
        ref = lax.conv_general_dilated(
            x, w_full,
            window_strides=(stride, stride),
            padding=[(padding, padding), (padding, padding)],
            rhs_dilation=(dilation, dilation),
            dimension_numbers=("NCHW", "OIHW", "NCHW"),
        ) + bias.reshape(1, -1, 1, 1)
        ref = jax.block_until_ready(ref)

        # bf16 operands with f32 accumulation -> loose-but-safe tolerance vs f32.
        np.testing.assert_allclose(np.asarray(out), np.asarray(ref),
                                   rtol=2e-2, atol=2e-2)

    print("KERNEL_OK")
</pallas_src>

<mosaic_0001>
module attributes {stable_mosaic.version = 11 : i64} {
  func.func @_qconv_matmul_kernel(%arg0: i32, %arg1: i32, %arg2: i32, %arg3: memref<8x128xbf16, #tpu.memory_space<vmem>>, %arg4: memref<1x128x256xbf16, #tpu.memory_space<vmem>>, %arg5: memref<1x8x256xf32, #tpu.memory_space<vmem>>, %arg6: memref<8x256xf32, #tpu.memory_space<vmem>>) attributes {dimension_semantics = [#tpu.dimension_semantics<parallel>, #tpu.dimension_semantics<parallel>, #tpu.dimension_semantics<arbitrary>], iteration_bounds = array<i64: 2, 1, 1>, scalar_prefetch = 0 : i64, scratch_operands = 1 : i64, tpu.core_type = #tpu.core_type<tc>, window_params = [{transform_indices = @transform_0, window_bounds = array<i64: 8, 128>}, {transform_indices = @transform_1, window_bounds = array<i64: 1, 128, 256>}, {transform_indices = @transform_2, window_bounds = array<i64: 1, 8, 256>}]} {
    %c0_i32 = arith.constant 0 : i32
    %0 = arith.cmpi eq, %arg2, %c0_i32 : i32
    %1 = arith.extui %0 : i1 to i32
    %c0_i32_0 = arith.constant 0 : i32
    %2 = arith.cmpi ne, %1, %c0_i32_0 : i32
    scf.if %2 {
      %cst_11 = arith.constant 0.000000e+00 : f32
      %13 = vector.broadcast %cst_11 : f32 to vector<8x256xf32>
      %c0_12 = arith.constant 0 : index
      %c0_13 = arith.constant 0 : index
      %14 = vector.load %arg6[%c0_12, %c0_13] : memref<8x256xf32, #tpu.memory_space<vmem>>, vector<8x256xf32>
      tpu.vector_store %arg6[%c0_12, %c0_13], %13 {strides = array<i32>} : memref<8x256xf32, #tpu.memory_space<vmem>>, vector<8x256xf32>,
    } else {
    }
    %c0 = arith.constant 0 : index
    %c0_1 = arith.constant 0 : index
    %3 = vector.load %arg6[%c0, %c0_1] : memref<8x256xf32, #tpu.memory_space<vmem>>, vector<8x256xf32>
    %c0_2 = arith.constant 0 : index
    %c0_3 = arith.constant 0 : index
    %4 = vector.load %arg3[%c0_2, %c0_3] : memref<8x128xbf16, #tpu.memory_space<vmem>>, vector<8x128xbf16>
    %c0_4 = arith.constant 0 : index
    %c0_5 = arith.constant 0 : index
    %c0_6 = arith.constant 0 : index
    %5 = vector.load %arg4[%c0_4, %c0_5, %c0_6] : memref<1x128x256xbf16, #tpu.memory_space<vmem>>, vector<1x128x256xbf16>
    %6 = vector.shape_cast %5 : vector<1x128x256xbf16> to vector<128x256xbf16>
    %cst = arith.constant dense<0.000000e+00> : vector<8x256xf32>
    %7 = tpu.matmul %4, %6, %cst {dimension_numbers = #tpu.dot_dimension_numbers<[1], [0], [0], [1], [0, 0, 1, 1], [], []>} : vector<8x128xbf16>, vector<128x256xbf16>, vector<8x256xf32> -> vector<8x256xf32>
    %8 = arith.addf %3, %7 : vector<8x256xf32>
    %c0_7 = arith.constant 0 : index
    %c0_8 = arith.constant 0 : index
    %9 = vector.load %arg6[%c0_7, %c0_8] : memref<8x256xf32, #tpu.memory_space<vmem>>, vector<8x256xf32>
    tpu.vector_store %arg6[%c0_7, %c0_8], %8 {strides = array<i32>} : memref<8x256xf32, #tpu.memory_space<vmem>>, vector<8x256xf32>,
    %c0_i32_9 = arith.constant 0 : i32
    %10 = arith.cmpi eq, %arg2, %c0_i32_9 : i32
    %11 = arith.extui %10 : i1 to i32
    %c0_i32_10 = arith.constant 0 : i32
    %12 = arith.cmpi ne, %11, %c0_i32_10 : i32
    scf.if %12 {
      %c0_11 = arith.constant 0 : index
      %c0_12 = arith.constant 0 : index
      %13 = vector.load %arg6[%c0_11, %c0_12] : memref<8x256xf32, #tpu.memory_space<vmem>>, vector<8x256xf32>
      %c0_13 = arith.constant 0 : index
      %c0_14 = arith.constant 0 : index
      %c0_15 = arith.constant 0 : index
      %14 = vector.load %arg5[%c0_13, %c0_14, %c0_15] : memref<1x8x256xf32, #tpu.memory_space<vmem>>, vector<1x8x256xf32>
      %15 = vector.shape_cast %14 : vector<1x8x256xf32> to vector<8x256xf32>
      %16 = vector.shape_cast %13 : vector<8x256xf32> to vector<1x8x256xf32>
      tpu.vector_store %arg5[%c0_13, %c0_14, %c0_15], %16 {strides = array<i32>} : memref<1x8x256xf32, #tpu.memory_space<vmem>>, vector<1x8x256xf32>,
    } else {
    }
    return
  }
  func.func @transform_0(%arg0: i32, %arg1: i32, %arg2: i32) -> (i32, i32) {
    %c0_i32 = arith.constant 0 : i32
    %c0_i32_0 = arith.constant 0 : i32
    return %c0_i32, %arg2 : i32, i32
  }
  func.func @transform_1(%arg0: i32, %arg1: i32, %arg2: i32) -> (i32, i32, i32) {
    %c0_i32 = arith.constant 0 : i32
    return %arg0, %arg2, %arg1 : i32, i32, i32
  }
  func.func @transform_2(%arg0: i32, %arg1: i32, %arg2: i32) -> (i32, i32, i32) {
    %c0_i32 = arith.constant 0 : i32
    %c0_i32_0 = arith.constant 0 : i32
    return %arg0, %c0_i32, %arg1 : i32, i32, i32
  }
}

</mosaic_0001>

<bundles_post_ra>
// kernel: tpu_custom_call.1
= control target key start
LH: loop header
LB: loop body
LE: loop exit
PB: predicated region body
PF: predicated region fallthrough
CT: control target
= control target key end

     0   :  { %7 = vsyncpa [#allocation4], 0  ;;  %s983_s0 = inlined_call_operand.hbm [shape: bf16[8,128], index: 0, kind: input, shape index: {}]   ;;  %s984_s1 = inlined_call_operand.hbm [shape: bf16[2,128,256], index: 1, kind: input, shape index: {}]   ;;  %s985_s2 = inlined_call_operand.hbm [shape: f32[2,8,256], index: 2, kind: output, shape index: {}]  }
   0x1   :  { %8 = vsyncpa [#allocation7], 0 }
   0x2   :  { %10 = vsyncpa [#allocation7 + $0x1], 0 }
   0x3   :  { %11 = vsyncpa [#allocation5], 0 }
   0x4   :  { %13 = vsyncpa [#allocation5 + $0x1], 0  ;;  %s789_s9 = smov 0   ;;  %s791_s10 = smov 0  }
   0x5   :  { %s793_s11 = smov 0   ;;  %s795_s12 = smov 0  }
   0x6   :  { %s797_s13 = smov 0   ;;  %s799_s14 = smov 0  }
   0x7 LB: > { %s493_s15 = sadd.s32 4294967295, %s766_s14   ;;  %s494_s16 = sadd.s32 4294967294, %s766_s14   ;;  %s766_s14 = sphi %s799_s14, %s19_s14   ;;  %s762_s13 = sphi %s797_s13, %s1004_s13   ;;  %s758_s12 = sphi %s795_s12, %s1003_s12   ;;  %s754_s11 = sphi %s793_s11, %s1002_s11   ;;  %s750_s10 = sphi %s791_s10, %s1001_s10   ;;  %s746_s9 = sphi %s789_s9, %s1000_s9  }
   0x8   : > { %s75_s17 = sadd.s32 1, %s754_s11  ;;  %p82_p0 = scmp.ne.s32.totalorder %s754_s11, %s750_s10 }
   0x9   : > { %p83_p1 = scmp.eq.s32.totalorder %s766_s14, 0  ;;  %p88_p2 = scmp.ne.s32.totalorder %s750_s10, %s746_s9 }
   0xa   : > { %p827_p3 = scmp.eq.s32.totalorder %s493_s15, 0  ;;  %p114_p4 = scmp.eq.s32.totalorder %s493_s15, 1 }
   0xb   : > { %p831_p5 = por %p83_p1, %p82_p0  ;;  %p120_p6 = scmp.eq.s32.totalorder %s494_s16, 1 }
   0xc   : > { %p837_p7 = por %p827_p3, %p88_p2  ;;  %p841_p8 = por %p114_p4, %p82_p0 }
   0xd   : > { %p845_p9 = por %p120_p6, %p88_p2  ;;  %p495_p10 = scmp.ge.s32.totalorder %s766_s14, 1 }
   0xe   : > { %s990_s20 = scalar_select %p837_p7, 1, 0 }
   0xf   : > { %s991_s21 = scalar_select %p841_p8, 1, 0 }
  0x10   : > { %s992_s22 = scalar_select %p845_p9, 1, 0 }
  0x11   : > { %p127_p11 = scmp.lt.s32.totalorder %s766_s14, 3  ;;  %s768_s24 = smov [#allocation3]  }
  0x12   : > { %s142_s25 = sshll.u32 %s768_s24, 4  ;;  %p549_p1 = scmp.lt.s32.totalorder %s766_s14, 2  ;;  %s143_s25 = int_to_ptr.vmem [resolvable:$true] %s142_s25 }
  0x13   : > { %p852_p13 = pnand %p495_p10, %p127_p11  ;;  %s38_s28 = sadd.s32 1, %s762_s13 }
  0x14   : > { %p861_p4 = pnand %p549_p1, %p831_p5  ;;  %p40_p6 = scmp.ge.s32.totalorder %s38_s28, 2 }
  0x15   : > { %p536_p0 = pneg %p852_p13  ;;  %s153_s29 = sand.u32 1, %s754_s11  }
  0x16   : > { %s639_s30 = scalar_lea.vmem %s143_s25, 64  ;;  %p647_p8 = scmp.lt.s32.totalorder %s143_s25, %s143_s25 }
  0x17   : > { %p867_p2 = pnand %p536_p0, %p827_p3  ;;  %p640_p11 = scmp.ne.s32.totalorder %s143_s25, %s639_s30 }
  0x18   : > { %p648_p5 = scmp.lt.s32.totalorder %s639_s30, %s639_s30 }
  0x19   : > { %p630_p10 = pneg %p867_p2 }
  0x1a   : > { %p649_p1 = por %p648_p5, %p647_p8 }
  0x1b   : > { %p642_p12 = pnand %p640_p11, %p630_p10 }
  0x1d   : > { %p643_p9 = pneg %p642_p12 }
  0x1f   : > { %p650_p7 = pnand %p649_p1, %p643_p9 }
  0x21   : > { %653 = shalt.err (!%p650_p7)
}
  0x22   : > { %539 = dma.hbm_to_vmem [thread:$0]  (!%p867_p2), %s983_s0, 64, %s143_s25, [#allocation4]  }
  0x23   : > { %s1006_s28 = smov (%p40_p6, %s38_s28), 0  ;;  %s498_s5 = sshll.u32 %s153_s29, 7 }
  0x24   : > { %s68_s6 = ssub.s32 %s762_s13, %s1006_s28  ;;  %s526_s7 = sshll.u32 %s762_s13, 11 }
  0x25   : > { %p73_p12 = scmp.eq.s32.totalorder %s68_s6, 0  ;;  %s168_s16 = scalar_lea.hbm %s984_s1, %s526_s7 }
  0x26   : > { %s157_s19 = scalar_lea.vmem [#allocation6], %s498_s5  ;;  %s154_s30 = scalar_lea.sflag [#allocation7], %s153_s29 }
  0x27   : > { %s169_s24 = sshll.u32 %s157_s19, 4  ;;  %p656_p7 = pneg %p861_p4  ;;  %s170_s24 = int_to_ptr.vmem [resolvable:$true] %s169_s24 }
  0x28   : > { %s891_s27 = scalar_select %p73_p12, %s754_s11, %s75_s17  }
  0x29   : > { %s667_s25 = scalar_lea.vmem %s170_s24, 2048  ;;  %s769_s3 = smov [#allocation6]  }
  0x2a   : > { %p668_p8 = scmp.ne.s32.totalorder %s170_s24, %s667_s25  ;;  %s672_s4 = sshll.u32 %s769_s3, 4  ;;  %s673_s4 = int_to_ptr.vmem [resolvable:$false] %s672_s4 }
  0x2b   : > { %s674_s6 = scalar_lea.vmem %s673_s4, 4096  ;;  %p675_p2 = scmp.lt.s32.totalorder %s170_s24, %s673_s4 }
  0x2c   : > { %p670_p9 = pnand %p668_p8, %p656_p7  ;;  %p676_p6 = scmp.lt.s32.totalorder %s674_s6, %s667_s25 }
  0x2e   : > { %p671_p0 = pneg %p670_p9  ;;  %p677_p10 = por %p676_p6, %p675_p2 }
  0x30   : > { %p678_p11 = pnand %p677_p10, %p671_p0 }
  0x32   : > { %681 = shalt.err (!%p678_p11)
}
  0x33   : > { %s770_s5 = smov 128   ;;  %s771_s17 = smov 8  }
  0x34   : > { %543 = dma.hbm_to_vmem [thread:$0]  (!%p861_p4), %s168_s16, 2048, %s170_s24, %s154_s30, %s770_s5, %s770_s5, %s771_s17  }
  0x35   : > { %181 = sbr.rel (%p852_p13) target bundleno = 305 (0x131), region = 28 }
  0x3a   : > { %733 = dma.done.wait (%p827_p3), [#allocation4], 64  }
  0x3b   : > { %735 = vsyncadd (%p827_p3), [#allocation4], 4294967232  ;;  %s904_s29 = sand.u32 1, %s750_s10   ;;  %p996_p4 = scmp.ne.s32.totalorder %s990_s20, 0 }
  0x3c   : > { %s503_s7 = sshll.u32 %s904_s29, 7  ;;  %s188_s8 = scalar_lea.sflag [#allocation7], %s904_s29 }
  0x3d   : > { %s908_s15 = scalar_lea.vmem [#allocation6], %s503_s7 }
  0x3e   : > { %737 = dma.done.wait (%p996_p4), %s188_s8, 2048  }
  0x3f   : > { %739 = vsyncadd (%p996_p4), %s188_s8, 4294965248  ;;  %v772_v0 = vmov 0   ;;  %v604_v1 = vld [vmem:[%s908_s15 + $0x74] ss:$8 sps:$4 sm:$0xff]   ;;  %v606_v2 = vld [vmem:[%s908_s15 + $0x70] ss:$8 sps:$4 sm:$0xff]  }
  0x40   : > { %353 = vmatprep.mubr.bf16.mxu0 %v772_v0  ;;  %321 = vmatprep.subr.bf16.mxu0 %v604_v1  ;;  %v607_v3 = vld [vmem:[%s908_s15 + $0x64] ss:$8 sps:$4 sm:$0xff]   ;;  %v609_v4 = vld [vmem:[%s908_s15 + $0x60] ss:$8 sps:$4 sm:$0xff]   ;;  %v610_v5 = vld [vmem:[%s908_s15 + $0x54] ss:$8 sps:$4 sm:$0xff]  }
  0x41   : > { %322 = vmatpush1.bf16.msra.mxu0 %v606_v2  ;;  %v612_v6 = vld [vmem:[%s908_s15 + $0x50] ss:$8 sps:$4 sm:$0xff]   ;;  %v613_v7 = vld [vmem:[%s908_s15 + $0x44] ss:$8 sps:$4 sm:$0xff]   ;;  %v615_v8 = vld [vmem:[%s908_s15 + $0x40] ss:$8 sps:$4 sm:$0xff]  }
  0x42   : > { %323 = vmatprep.subr.bf16.mxu0 %v607_v3  ;;  %v616_v9 = vld [vmem:[%s908_s15 + $0x34] ss:$8 sps:$4 sm:$0xff]   ;;  %v618_v10 = vld [vmem:[%s908_s15 + $0x30] ss:$8 sps:$4 sm:$0xff]   ;;  %v619_v11 = vld [vmem:[%s908_s15 + $0x24] ss:$8 sps:$4 sm:$0xff]  }
  0x43   : > { %v621_v12 = vld [vmem:[%s908_s15 + $0x20] ss:$8 sps:$4 sm:$0xff]   ;;  %v622_v13 = vld [vmem:[%s908_s15 + $0x14] ss:$8 sps:$4 sm:$0xff]   ;;  %v624_v14 = vld [vmem:[%s908_s15 + $0x10] ss:$8 sps:$4 sm:$0xff]  }
  0x44   : > { %v625_v15 = vld [vmem:[%s908_s15 + $0x4] ss:$8 sps:$4 sm:$0xff]   ;;  %v627_v16 = vld [vmem:[%s908_s15] ss:$8 sps:$4 sm:$0xff]   ;;  %v224_v17 = vld [vmem:[#allocation3] sm:$0xf] }
  0x45   : > { %324 = vmatpush1.bf16.msra.mxu0 %v609_v4  ;;  %s504_s18 = sshll.u32 %s904_s29, 4  ;;  %s527_s26 = sshll.u32 %s758_s12, 8 }
  0x46   : > { %325 = vmatprep.subr.bf16.mxu0 %v610_v5  ;;  %s211_s20 = scalar_lea.vmem [#allocation8], %s504_s18  ;;  %s937_s24 = scalar_lea.hbm %s985_s2, %s527_s26 }
  0x47   : > { %s390_s23 = sshll.u32 %s211_s20, 4  ;;  %s374_s30 = scalar_lea.sflag [#allocation5], %s904_s29  ;;  %s932_s23 = int_to_ptr.vmem [resolvable:$true] %s390_s23 }
  0x48   : > { %s682_s25 = scalar_lea.vmem %s932_s23, 256  ;;  %p997_p13 = scmp.ne.s32.totalorder %s991_s21, 0 }
  0x49   : > { %326 = vmatpush1.bf16.msra.mxu0 %v612_v6  ;;  %p683_p3 = scmp.ne.s32.totalorder %s932_s23, %s682_s25  ;;  %s773_s12 = smov [#allocation8]  }
  0x4a   : > { %327 = vmatprep.subr.bf16.mxu0 %v613_v7  ;;  %s686_s3 = sshll.u32 %s773_s12, 4  ;;  %s687_s3 = int_to_ptr.vmem [resolvable:$false] %s686_s3 }
  0x4b   : > { %p684_p5 = pnand %p683_p3, %p997_p13  ;;  %s688_s4 = scalar_lea.vmem %s687_s3, 512 }
  0x4c   : > { %p689_p12 = scmp.lt.s32.totalorder %s932_s23, %s687_s3  ;;  %p690_p7 = scmp.lt.s32.totalorder %s688_s4, %s682_s25 }
  0x4d   : > { %328 = vmatpush1.bf16.msra.mxu0 %v615_v8  ;;  %p685_p1 = pneg %p684_p5 }
  0x4e   : > { %329 = vmatprep.subr.bf16.mxu0 %v616_v9  ;;  %p691_p8 = por %p690_p7, %p689_p12 }
  0x50   : > { %p692_p9 = pnand %p691_p8, %p685_p1 }
  0x51   : > { %330 = vmatpush1.bf16.msra.mxu0 %v618_v10 }
  0x52   : > { %331 = vmatprep.subr.bf16.mxu0 %v619_v11 }
  0x55   : > { %332 = vmatpush1.bf16.msra.mxu0 %v621_v12 }
  0x56   : > { %333 = vmatprep.subr.bf16.mxu0 %v622_v13 }
  0x59   : > { %334 = vmatpush1.bf16.msra.mxu0 %v624_v14 }
  0x5a   : > { %335 = vmatprep.subr.bf16.mxu0 %v625_v15 }
  0x5d   : > { %336 = vmatpush1.bf16.msra.mxu0 %v627_v16 }
  0x60   : > { %354 = vmatmul.mubr.bf16.vlgmr.msra.gmra.mxu0 %v224_v17 }
 0x120   : > { %v355_v18 = vpop.f32.mrf.mxu0 }
 0x121   : > { %371 = vst [vmem:[%s211_s20] sm:$0xff] %v355_v18 }
 0x122   : > { %v357_v19 = vpop.f32.mrf.mxu0 }
 0x123   : > { %372 = vst [vmem:[%s211_s20 + $0x8] sm:$0xff] %v357_v19 }
 0x124   : > { %v359_v20 = vpop.f32.mrf.mxu0 }
 0x125   : > { %695 = shalt.err (!%p692_p9)
}
 0x126   : > { %s696_s6 = scalar_lea.hbm %s937_s24, 256  ;;  %s700_s29 = scalar_lea.hbm %s985_s2, 512 }
 0x127   : > { %p697_p0 = scmp.ne.s32.totalorder %s937_s24, %s696_s6  ;;  %p701_p10 = scmp.lt.s32.totalorder %s937_s24, %s985_s2 }
 0x128   : > { %p702_p11 = scmp.lt.s32.totalorder %s700_s29, %s696_s6 }
 0x129   : > { %p698_p2 = pnand %p697_p0, %p997_p13 }
 0x12a   : > { %p703_p4 = por %p702_p11, %p701_p10 }
 0x12b   : > { %p699_p6 = pneg %p698_p2 }
 0x12d   : > { %p704_p3 = pnand %p703_p4, %p699_p6 }
 0x12f   : > { %707 = shalt.err (!%p704_p3)
}
 0x130   : > { %534 = dma.vmem_to_hbm [thread:$0]  (%p997_p13), %s932_s23, 256, %s937_s24, %s374_s30   ;;  %v360_v21 = vpop.f32.mrf.mxu0 }
 0x131 PF: > { %s402_s15 = sand.u32 1, %s746_s9   ;;  %p998_p5 = scmp.ne.s32.totalorder %s992_s22, 0 }
 0x132   : > { %p999_p1 = scmp.ge.s32.totalorder %s766_s14, 2  ;;  %s403_s18 = scalar_lea.sflag [#allocation5], %s402_s15 }
 0x134   : > { %p545_p12 = pnand %p999_p1, %p998_p5 }
 0x136   : > { %p546_p7 = pneg %p545_p12 }
 0x138   : > { %741 = dma.done.wait (%p546_p7), %s403_s18, 256  }
 0x139   : > { %743 = vsyncadd (%p546_p7), %s403_s18, 4294967040  ;;  %s19_s14 = sadd.s32 1, %s766_s14   ;;  %s1000_s9 = smov %s750_s10 }
 0x13a   : > { %p16_p8 = scmp.ge.s32.totalorder %s19_s14, 4   ;;  %s1001_s10 = smov %s754_s11 }
 0x13b   : > { %s1002_s11 = smov %s891_s27  ;;  %s1003_s12 = smov %s762_s13 }
 0x13c   : > { %s1004_s13 = smov %s1006_s28  ;;  %18 = sbr.rel (!%p16_p8) target bundleno = 7 (0x7), region = 87 }
 0x141   :  { %408 = vsyncpa [#allocation4], 1 }
 0x142   :  { %410 = vsyncpa [#allocation4 + $0x1], 1 }
 0x143   :  { %411 = vsyncpa [#allocation7], 1 }
 0x144   :  { %413 = vsyncpa [#allocation7 + $0x1], 1 }
 0x145   :  { %414 = vsyncpa [#allocation5], 1 }
 0x146   :  { %416 = vsyncpa [#allocation5 + $0x1], 1 }

</bundles_post_ra>
